<compile_context>
chip_gen: v7x
topology: tpu7x:2x2x1
jax: 0.10.0
libtpu: 0.0.40
codegen_flags: <defaults>
</compile_context>

<pallas_src>
import functools

import jax
import jax.numpy as jnp
from jax import lax
from jax.experimental import pallas as pl
from jax.experimental.pallas import tpu as pltpu


def _residual_block_kernel(x_ref, mask_ref, s1_ref, t1_ref, w1_ref, t2_ref,
                           w2_ref, b2_ref, o_ref, *, W):
    # x_ref: (1, Cp, HW) f32 block for one batch element (channels-first,
    # spatially flattened, channels padded to Cp = multiple of 16).
    Cp, HW = x_ref.shape[1], x_ref.shape[2]

    x = x_ref[0]                  # (Cp, HW) f32
    masks = mask_ref[...]         # (9, 1, HW) f32 conv edge masks

    def conv3x3(h, w_ref):
        # im2col slab (9*Cp, HW) in bf16, one MXU matmul against (Cp, 9*Cp).
        taps = []
        k = 0
        for dy in (-1, 0, 1):
            for dx in (-1, 0, 1):
                d = dy * W + dx
                if d == 0:
                    p = h
                else:
                    # p[c, i] = h[c, i + d]  (lane rotation, XLU)
                    p = pltpu.roll(h, shift=(-d) % HW, axis=1)
                    # zero out rows/cols that wrapped or crossed an image edge
                    p = p * masks[k]
                # Cp % 16 == 0, so each bf16 tap is sublane-tile aligned and
                # the concat below is layout-free.
                taps.append(p.astype(jnp.bfloat16))
                k += 1
        slab = jnp.concatenate(taps, axis=0)          # (9*Cp, HW) bf16
        return jnp.dot(w_ref[...], slab,
                       preferred_element_type=jnp.float32)   # (Cp, HW) f32

    # BN1 (eval-mode affine) + ReLU
    h1 = jnp.maximum(x * s1_ref[...] + t1_ref[...], 0.0)
    # conv1 (BN2 scale + conv1 bias folded into w1'/t2') + BN2 shift + ReLU
    h2 = jnp.maximum(conv3x3(h1, w1_ref) + t2_ref[...], 0.0)
    # conv2 + bias + residual
    o_ref[0] = (x + conv3x3(h2, w2_ref) + b2_ref[...]).astype(o_ref.dtype)


def residual_block(x_nchw, params, *, eps=1e-5):
    """x_nchw: (N, C, H, W) float32.  Returns (N, C, H, W)."""
    N, C, H, W = x_nchw.shape
    HW = H * W
    # Pad channels only to the bf16 sublane tile (16), not 128: the MXU
    # contraction/output dims tolerate small sublane extents, and this slashes
    # DMA + VPU work for small channel counts.
    Cp = ((C + 15) // 16) * 16
    pc = Cp - C
    f32 = jnp.float32

    # Fold BN (eval mode) into per-channel scale/shift.
    def bn_affine(g, b, m, v):
        s = g / jnp.sqrt(v + eps)
        return s, b - m * s

    s1, t1 = bn_affine(params['bn1_gamma'], params['bn1_beta'],
                       params['bn1_mean'], params['bn1_var'])
    s2, t2 = bn_affine(params['bn2_gamma'], params['bn2_beta'],
                       params['bn2_mean'], params['bn2_var'])

    # Conv weights: PyTorch (Cout, Cin, kH, kW) -> (9, Cout, Cin), k = kh*3+kw.
    def w9(w):
        return jnp.transpose(w, (2, 3, 0, 1)).reshape(9, C, C)

    # Fold BN2 scale into conv1 weights; fold conv1 bias + BN2 shift together.
    w1_9 = w9(params['conv1_w']) * s2[None, :, None]
    t2f = params['conv1_b'] * s2 + t2
    w2_9 = w9(params['conv2_w'])
    b2 = params['conv2_b']

    def wmat(w):   # (9, C, C)[k, cout, cin] -> (Cp, 9*Cp) bf16
        wp = jnp.pad(w, ((0, 0), (0, pc), (0, pc)))
        return jnp.transpose(wp, (1, 0, 2)).reshape(Cp, 9 * Cp).astype(jnp.bfloat16)

    def cvec(v):   # (C,) -> (Cp, 1) f32
        return jnp.pad(v, (0, pc)).reshape(Cp, 1).astype(f32)

    # Precompute the 9 conv-tap edge masks over the flattened spatial index.
    yy, xx = jnp.meshgrid(jnp.arange(H), jnp.arange(W), indexing='ij')
    mlist = []
    for dy in (-1, 0, 1):
        for dx in (-1, 0, 1):
            valid = ((yy + dy >= 0) & (yy + dy < H) &
                     (xx + dx >= 0) & (xx + dx < W))
            mlist.append(valid.reshape(1, HW))
    masks = jnp.stack(mlist, 0).astype(f32)            # (9, 1, HW)

    # Channels-first layout, padded channels, flattened spatial dim.
    x_in = jnp.pad(x_nchw.astype(f32), ((0, 0), (0, pc), (0, 0), (0, 0)))
    x_in = x_in.reshape(N, Cp, HW)

    kernel = functools.partial(_residual_block_kernel, W=W)

    vec_spec = lambda: pl.BlockSpec((Cp, 1), lambda n: (0, 0))
    mat_spec = lambda: pl.BlockSpec((Cp, 9 * Cp), lambda n: (0, 0))

    out = pl.pallas_call(
        kernel,
        out_shape=jax.ShapeDtypeStruct((N, Cp, HW), f32),
        grid_spec=pltpu.PrefetchScalarGridSpec(
            num_scalar_prefetch=0,
            grid=(N,),
            in_specs=[
                pl.BlockSpec((1, Cp, HW), lambda n: (n, 0, 0)),   # x
                pl.BlockSpec((9, 1, HW), lambda n: (0, 0, 0)),    # edge masks
                vec_spec(), vec_spec(),                           # s1, t1
                mat_spec(),                                       # w1'
                vec_spec(),                                       # t2'
                mat_spec(),                                       # w2
                vec_spec(),                                       # b2
            ],
            out_specs=pl.BlockSpec((1, Cp, HW), lambda n: (n, 0, 0)),
        ),
        input_output_aliases={0: 0},
        compiler_params=pltpu.CompilerParams(
            dimension_semantics=("parallel",),
            vmem_limit_bytes=32 * 1024 * 1024),
    )(x_in, masks, cvec(s1), cvec(t1), wmat(w1_9), cvec(t2f), wmat(w2_9),
      cvec(b2))

    return out[:, :C, :].reshape(N, C, H, W)


def _reference(x, params, eps=1e-5):
    """Plain-JAX reference (NCHW), same eval-mode BN semantics, f32 convs."""
    def bn(x, g, b, m, v):
        s = g / jnp.sqrt(v + eps)
        return x * s[None, :, None, None] + (b - m * s)[None, :, None, None]

    def conv(x, w, b):
        y = lax.conv_general_dilated(
            x, w, window_strides=(1, 1), padding='SAME',
            dimension_numbers=('NCHW', 'OIHW', 'NCHW'))
        return y + b[None, :, None, None]

    r = jnp.maximum(bn(x, params['bn1_gamma'], params['bn1_beta'],
                       params['bn1_mean'], params['bn1_var']), 0.0)
    r = conv(r, params['conv1_w'], params['conv1_b'])
    r = jnp.maximum(bn(r, params['bn2_gamma'], params['bn2_beta'],
                       params['bn2_mean'], params['bn2_var']), 0.0)
    r = conv(r, params['conv2_w'], params['conv2_b'])
    return x + r


def make_params(key, channels):
    ks = jax.random.split(key, 8)
    C = channels
    return {
        'bn1_gamma': 1.0 + 0.1 * jax.random.normal(ks[0], (C,), jnp.float32),
        'bn1_beta':  0.1 * jax.random.normal(ks[1], (C,), jnp.float32),
        'bn1_mean':  0.1 * jax.random.normal(ks[2], (C,), jnp.float32),
        'bn1_var':   1.0 + 0.1 * jax.random.uniform(ks[3], (C,), jnp.float32),
        'conv1_w':   0.1 * jax.random.normal(ks[4], (C, C, 3, 3), jnp.float32),
        'conv1_b':   0.05 * jax.random.normal(ks[5], (C,), jnp.float32),
        'bn2_gamma': 1.0 + 0.1 * jax.random.normal(ks[6], (C,), jnp.float32),
        'bn2_beta':  0.1 * jax.random.normal(ks[7], (C,), jnp.float32),
        'bn2_mean':  0.05 * jax.random.normal(ks[2], (C,), jnp.float32),
        'bn2_var':   1.0 + 0.1 * jax.random.uniform(ks[1], (C,), jnp.float32),
        'conv2_w':   0.1 * jax.random.normal(ks[0], (C, C, 3, 3), jnp.float32),
        'conv2_b':   0.05 * jax.random.normal(ks[3], (C,), jnp.float32),
    }


if __name__ == "__main__":
    key = jax.random.PRNGKey(0)
    k_x, k_p = jax.random.split(key)

    N, C, H, W = 2, 4, 16, 16
    x = jax.random.normal(k_x, (N, C, H, W), jnp.float32)
    params = make_params(k_p, C)

    out = jax.jit(functools.partial(residual_block, params=params))(x)
    out = jax.block_until_ready(out)

    ref = _reference(x, params)
    assert out.shape == (N, C, H, W)
    # Tolerance loosened vs a pure-f32 version: conv matmuls run in bf16
    # (f32 accumulation) on the MXU.
    err = jnp.max(jnp.abs(out - ref))
    assert jnp.allclose(out, ref, atol=5e-2, rtol=5e-2), f"max err {err}"

    print("KERNEL_OK")
</pallas_src>

<mosaic_0001>
module attributes {stable_mosaic.version = 11 : i64} {
  func.func @_residual_block_kernel(%arg0: i32, %arg1: memref<1x16x256xf32, #tpu.memory_space<vmem>>, %arg2: memref<9x1x256xf32, #tpu.memory_space<vmem>>, %arg3: memref<16x1xf32, #tpu.memory_space<vmem>>, %arg4: memref<16x1xf32, #tpu.memory_space<vmem>>, %arg5: memref<16x144xbf16, #tpu.memory_space<vmem>>, %arg6: memref<16x1xf32, #tpu.memory_space<vmem>>, %arg7: memref<16x144xbf16, #tpu.memory_space<vmem>>, %arg8: memref<16x1xf32, #tpu.memory_space<vmem>>, %arg9: memref<1x16x256xf32, #tpu.memory_space<vmem>>) attributes {dimension_semantics = [#tpu.dimension_semantics<parallel>], iteration_bounds = array<i64: 2>, scalar_prefetch = 0 : i64, scratch_operands = 0 : i64, tpu.core_type = #tpu.core_type<tc>, window_params = [{transform_indices = @transform_0, window_bounds = array<i64: 1, 16, 256>}, {pipeline_mode = #tpu.pipeline_mode<synchronous>, transform_indices = @transform_1, window_bounds = array<i64: 9, 1, 256>}, {pipeline_mode = #tpu.pipeline_mode<synchronous>, transform_indices = @transform_2, window_bounds = array<i64: 16, 1>}, {pipeline_mode = #tpu.pipeline_mode<synchronous>, transform_indices = @transform_3, window_bounds = array<i64: 16, 1>}, {pipeline_mode = #tpu.pipeline_mode<synchronous>, transform_indices = @transform_4, window_bounds = array<i64: 16, 144>}, {pipeline_mode = #tpu.pipeline_mode<synchronous>, transform_indices = @transform_5, window_bounds = array<i64: 16, 1>}, {pipeline_mode = #tpu.pipeline_mode<synchronous>, transform_indices = @transform_6, window_bounds = array<i64: 16, 144>}, {pipeline_mode = #tpu.pipeline_mode<synchronous>, transform_indices = @transform_7, window_bounds = array<i64: 16, 1>}, {transform_indices = @transform_8, window_bounds = array<i64: 1, 16, 256>}]} {
    %c0 = arith.constant 0 : index
    %c0_0 = arith.constant 0 : index
    %c0_1 = arith.constant 0 : index
    %0 = vector.load %arg1[%c0, %c0_0, %c0_1] : memref<1x16x256xf32, #tpu.memory_space<vmem>>, vector<1x16x256xf32>
    %1 = vector.shape_cast %0 : vector<1x16x256xf32> to vector<16x256xf32>
    %c0_2 = arith.constant 0 : index
    %c0_3 = arith.constant 0 : index
    %c0_4 = arith.constant 0 : index
    %2 = vector.load %arg2[%c0_2, %c0_3, %c0_4] : memref<9x1x256xf32, #tpu.memory_space<vmem>>, vector<9x1x256xf32>
    %c0_5 = arith.constant 0 : index
    %c0_6 = arith.constant 0 : index
    %3 = vector.load %arg3[%c0_5, %c0_6] : memref<16x1xf32, #tpu.memory_space<vmem>>, vector<16x1xf32>
    %4 = vector.broadcast %3 : vector<16x1xf32> to vector<16x256xf32>
    %5 = arith.mulf %1, %4 : vector<16x256xf32>
    %c0_7 = arith.constant 0 : index
    %c0_8 = arith.constant 0 : index
    %6 = vector.load %arg4[%c0_7, %c0_8] : memref<16x1xf32, #tpu.memory_space<vmem>>, vector<16x1xf32>
    %7 = vector.broadcast %6 : vector<16x1xf32> to vector<16x256xf32>
    %8 = arith.addf %5, %7 : vector<16x256xf32>
    %cst = arith.constant 0.000000e+00 : f32
    %9 = vector.broadcast %cst : f32 to vector<16x256xf32>
    %10 = arith.maximumf %8, %9 : vector<16x256xf32>
    %c17_i32 = arith.constant 17 : i32
    %11 = tpu.dynamic_rotate %10 by %c17_i32 dim 1 : vector<16x256xf32>, i32 -> vector<16x256xf32>
    %12 = vector.extract_strided_slice %2 {offsets = [0, 0, 0], sizes = [1, 1, 256], strides = [1, 1, 1]} : vector<9x1x256xf32> to vector<1x1x256xf32>
    %13 = vector.shape_cast %12 : vector<1x1x256xf32> to vector<1x256xf32>
    %14 = vector.broadcast %13 : vector<1x256xf32> to vector<16x256xf32>
    %15 = arith.mulf %11, %14 : vector<16x256xf32>
    %16 = arith.truncf %15 : vector<16x256xf32> to vector<16x256xbf16>
    %c16_i32 = arith.constant 16 : i32
    %17 = tpu.dynamic_rotate %10 by %c16_i32 dim 1 : vector<16x256xf32>, i32 -> vector<16x256xf32>
    %18 = vector.extract_strided_slice %2 {offsets = [1, 0, 0], sizes = [1, 1, 256], strides = [1, 1, 1]} : vector<9x1x256xf32> to vector<1x1x256xf32>
    %19 = vector.shape_cast %18 : vector<1x1x256xf32> to vector<1x256xf32>
    %20 = vector.broadcast %19 : vector<1x256xf32> to vector<16x256xf32>
    %21 = arith.mulf %17, %20 : vector<16x256xf32>
    %22 = arith.truncf %21 : vector<16x256xf32> to vector<16x256xbf16>
    %c15_i32 = arith.constant 15 : i32
    %23 = tpu.dynamic_rotate %10 by %c15_i32 dim 1 : vector<16x256xf32>, i32 -> vector<16x256xf32>
    %24 = vector.extract_strided_slice %2 {offsets = [2, 0, 0], sizes = [1, 1, 256], strides = [1, 1, 1]} : vector<9x1x256xf32> to vector<1x1x256xf32>
    %25 = vector.shape_cast %24 : vector<1x1x256xf32> to vector<1x256xf32>
    %26 = vector.broadcast %25 : vector<1x256xf32> to vector<16x256xf32>
    %27 = arith.mulf %23, %26 : vector<16x256xf32>
    %28 = arith.truncf %27 : vector<16x256xf32> to vector<16x256xbf16>
    %c1_i32 = arith.constant 1 : i32
    %29 = tpu.dynamic_rotate %10 by %c1_i32 dim 1 : vector<16x256xf32>, i32 -> vector<16x256xf32>
    %30 = vector.extract_strided_slice %2 {offsets = [3, 0, 0], sizes = [1, 1, 256], strides = [1, 1, 1]} : vector<9x1x256xf32> to vector<1x1x256xf32>
    %31 = vector.shape_cast %30 : vector<1x1x256xf32> to vector<1x256xf32>
    %32 = vector.broadcast %31 : vector<1x256xf32> to vector<16x256xf32>
    %33 = arith.mulf %29, %32 : vector<16x256xf32>
    %34 = arith.truncf %33 : vector<16x256xf32> to vector<16x256xbf16>
    %35 = arith.truncf %10 : vector<16x256xf32> to vector<16x256xbf16>
    %c255_i32 = arith.constant 255 : i32
    %36 = tpu.dynamic_rotate %10 by %c255_i32 dim 1 : vector<16x256xf32>, i32 -> vector<16x256xf32>
    %37 = vector.extract_strided_slice %2 {offsets = [5, 0, 0], sizes = [1, 1, 256], strides = [1, 1, 1]} : vector<9x1x256xf32> to vector<1x1x256xf32>
    %38 = vector.shape_cast %37 : vector<1x1x256xf32> to vector<1x256xf32>
    %39 = vector.broadcast %38 : vector<1x256xf32> to vector<16x256xf32>
    %40 = arith.mulf %36, %39 : vector<16x256xf32>
    %41 = arith.truncf %40 : vector<16x256xf32> to vector<16x256xbf16>
    %c241_i32 = arith.constant 241 : i32
    %42 = tpu.dynamic_rotate %10 by %c241_i32 dim 1 : vector<16x256xf32>, i32 -> vector<16x256xf32>
    %43 = vector.extract_strided_slice %2 {offsets = [6, 0, 0], sizes = [1, 1, 256], strides = [1, 1, 1]} : vector<9x1x256xf32> to vector<1x1x256xf32>
    %44 = vector.shape_cast %43 : vector<1x1x256xf32> to vector<1x256xf32>
    %45 = vector.broadcast %44 : vector<1x256xf32> to vector<16x256xf32>
    %46 = arith.mulf %42, %45 : vector<16x256xf32>
    %47 = arith.truncf %46 : vector<16x256xf32> to vector<16x256xbf16>
    %c240_i32 = arith.constant 240 : i32
    %48 = tpu.dynamic_rotate %10 by %c240_i32 dim 1 : vector<16x256xf32>, i32 -> vector<16x256xf32>
    %49 = vector.extract_strided_slice %2 {offsets = [7, 0, 0], sizes = [1, 1, 256], strides = [1, 1, 1]} : vector<9x1x256xf32> to vector<1x1x256xf32>
    %50 = vector.shape_cast %49 : vector<1x1x256xf32> to vector<1x256xf32>
    %51 = vector.broadcast %50 : vector<1x256xf32> to vector<16x256xf32>
    %52 = arith.mulf %48, %51 : vector<16x256xf32>
    %53 = arith.truncf %52 : vector<16x256xf32> to vector<16x256xbf16>
    %c239_i32 = arith.constant 239 : i32
    %54 = tpu.dynamic_rotate %10 by %c239_i32 dim 1 : vector<16x256xf32>, i32 -> vector<16x256xf32>
    %55 = vector.extract_strided_slice %2 {offsets = [8, 0, 0], sizes = [1, 1, 256], strides = [1, 1, 1]} : vector<9x1x256xf32> to vector<1x1x256xf32>
    %56 = vector.shape_cast %55 : vector<1x1x256xf32> to vector<1x256xf32>
    %57 = vector.broadcast %56 : vector<1x256xf32> to vector<16x256xf32>
    %58 = arith.mulf %54, %57 : vector<16x256xf32>
    %59 = arith.truncf %58 : vector<16x256xf32> to vector<16x256xbf16>
    %60 = tpu.concatenate %16, %22, %28, %34, %35, %41, %47, %53, %59 in 0 : vector<16x256xbf16>, vector<16x256xbf16>, vector<16x256xbf16>, vector<16x256xbf16>, vector<16x256xbf16>, vector<16x256xbf16>, vector<16x256xbf16>, vector<16x256xbf16>, vector<16x256xbf16> -> vector<144x256xbf16>
    %c0_9 = arith.constant 0 : index
    %c0_10 = arith.constant 0 : index
    %61 = vector.load %arg5[%c0_9, %c0_10] : memref<16x144xbf16, #tpu.memory_space<vmem>>, vector<16x144xbf16>
    %cst_11 = arith.constant dense<0.000000e+00> : vector<16x256xf32>
    %62 = tpu.matmul %61, %60, %cst_11 {dimension_numbers = #tpu.dot_dimension_numbers<[1], [0], [0], [1], [0, 0, 1, 1], [], []>} : vector<16x144xbf16>, vector<144x256xbf16>, vector<16x256xf32> -> vector<16x256xf32>
    %c0_12 = arith.constant 0 : index
    %c0_13 = arith.constant 0 : index
    %63 = vector.load %arg6[%c0_12, %c0_13] : memref<16x1xf32, #tpu.memory_space<vmem>>, vector<16x1xf32>
    %64 = vector.broadcast %63 : vector<16x1xf32> to vector<16x256xf32>
    %65 = arith.addf %62, %64 : vector<16x256xf32>
    %cst_14 = arith.constant 0.000000e+00 : f32
    %66 = vector.broadcast %cst_14 : f32 to vector<16x256xf32>
    %67 = arith.maximumf %65, %66 : vector<16x256xf32>
    %c17_i32_15 = arith.constant 17 : i32
    %68 = tpu.dynamic_rotate %67 by %c17_i32_15 dim 1 : vector<16x256xf32>, i32 -> vector<16x256xf32>
    %69 = vector.extract_strided_slice %2 {offsets = [0, 0, 0], sizes = [1, 1, 256], strides = [1, 1, 1]} : vector<9x1x256xf32> to vector<1x1x256xf32>
    %70 = vector.shape_cast %69 : vector<1x1x256xf32> to vector<1x256xf32>
    %71 = vector.broadcast %70 : vector<1x256xf32> to vector<16x256xf32>
    %72 = arith.mulf %68, %71 : vector<16x256xf32>
    %73 = arith.truncf %72 : vector<16x256xf32> to vector<16x256xbf16>
    %c16_i32_16 = arith.constant 16 : i32
    %74 = tpu.dynamic_rotate %67 by %c16_i32_16 dim 1 : vector<16x256xf32>, i32 -> vector<16x256xf32>
    %75 = vector.extract_strided_slice %2 {offsets = [1, 0, 0], sizes = [1, 1, 256], strides = [1, 1, 1]} : vector<9x1x256xf32> to vector<1x1x256xf32>
    %76 = vector.shape_cast %75 : vector<1x1x256xf32> to vector<1x256xf32>
    %77 = vector.broadcast %76 : vector<1x256xf32> to vector<16x256xf32>
    %78 = arith.mulf %74, %77 : vector<16x256xf32>
    %79 = arith.truncf %78 : vector<16x256xf32> to vector<16x256xbf16>
    %c15_i32_17 = arith.constant 15 : i32
    %80 = tpu.dynamic_rotate %67 by %c15_i32_17 dim 1 : vector<16x256xf32>, i32 -> vector<16x256xf32>
    %81 = vector.extract_strided_slice %2 {offsets = [2, 0, 0], sizes = [1, 1, 256], strides = [1, 1, 1]} : vector<9x1x256xf32> to vector<1x1x256xf32>
    %82 = vector.shape_cast %81 : vector<1x1x256xf32> to vector<1x256xf32>
    %83 = vector.broadcast %82 : vector<1x256xf32> to vector<16x256xf32>
    %84 = arith.mulf %80, %83 : vector<16x256xf32>
    %85 = arith.truncf %84 : vector<16x256xf32> to vector<16x256xbf16>
    %c1_i32_18 = arith.constant 1 : i32
    %86 = tpu.dynamic_rotate %67 by %c1_i32_18 dim 1 : vector<16x256xf32>, i32 -> vector<16x256xf32>
    %87 = vector.extract_strided_slice %2 {offsets = [3, 0, 0], sizes = [1, 1, 256], strides = [1, 1, 1]} : vector<9x1x256xf32> to vector<1x1x256xf32>
    %88 = vector.shape_cast %87 : vector<1x1x256xf32> to vector<1x256xf32>
    %89 = vector.broadcast %88 : vector<1x256xf32> to vector<16x256xf32>
    %90 = arith.mulf %86, %89 : vector<16x256xf32>
    %91 = arith.truncf %90 : vector<16x256xf32> to vector<16x256xbf16>
    %92 = arith.truncf %67 : vector<16x256xf32> to vector<16x256xbf16>
    %c255_i32_19 = arith.constant 255 : i32
    %93 = tpu.dynamic_rotate %67 by %c255_i32_19 dim 1 : vector<16x256xf32>, i32 -> vector<16x256xf32>
    %94 = vector.extract_strided_slice %2 {offsets = [5, 0, 0], sizes = [1, 1, 256], strides = [1, 1, 1]} : vector<9x1x256xf32> to vector<1x1x256xf32>
    %95 = vector.shape_cast %94 : vector<1x1x256xf32> to vector<1x256xf32>
    %96 = vector.broadcast %95 : vector<1x256xf32> to vector<16x256xf32>
    %97 = arith.mulf %93, %96 : vector<16x256xf32>
    %98 = arith.truncf %97 : vector<16x256xf32> to vector<16x256xbf16>
    %c241_i32_20 = arith.constant 241 : i32
    %99 = tpu.dynamic_rotate %67 by %c241_i32_20 dim 1 : vector<16x256xf32>, i32 -> vector<16x256xf32>
    %100 = vector.extract_strided_slice %2 {offsets = [6, 0, 0], sizes = [1, 1, 256], strides = [1, 1, 1]} : vector<9x1x256xf32> to vector<1x1x256xf32>
    %101 = vector.shape_cast %100 : vector<1x1x256xf32> to vector<1x256xf32>
    %102 = vector.broadcast %101 : vector<1x256xf32> to vector<16x256xf32>
    %103 = arith.mulf %99, %102 : vector<16x256xf32>
    %104 = arith.truncf %103 : vector<16x256xf32> to vector<16x256xbf16>
    %c240_i32_21 = arith.constant 240 : i32
    %105 = tpu.dynamic_rotate %67 by %c240_i32_21 dim 1 : vector<16x256xf32>, i32 -> vector<16x256xf32>
    %106 = vector.extract_strided_slice %2 {offsets = [7, 0, 0], sizes = [1, 1, 256], strides = [1, 1, 1]} : vector<9x1x256xf32> to vector<1x1x256xf32>
    %107 = vector.shape_cast %106 : vector<1x1x256xf32> to vector<1x256xf32>
    %108 = vector.broadcast %107 : vector<1x256xf32> to vector<16x256xf32>
    %109 = arith.mulf %105, %108 : vector<16x256xf32>
    %110 = arith.truncf %109 : vector<16x256xf32> to vector<16x256xbf16>
    %c239_i32_22 = arith.constant 239 : i32
    %111 = tpu.dynamic_rotate %67 by %c239_i32_22 dim 1 : vector<16x256xf32>, i32 -> vector<16x256xf32>
    %112 = vector.extract_strided_slice %2 {offsets = [8, 0, 0], sizes = [1, 1, 256], strides = [1, 1, 1]} : vector<9x1x256xf32> to vector<1x1x256xf32>
    %113 = vector.shape_cast %112 : vector<1x1x256xf32> to vector<1x256xf32>
    %114 = vector.broadcast %113 : vector<1x256xf32> to vector<16x256xf32>
    %115 = arith.mulf %111, %114 : vector<16x256xf32>
    %116 = arith.truncf %115 : vector<16x256xf32> to vector<16x256xbf16>
    %117 = tpu.concatenate %73, %79, %85, %91, %92, %98, %104, %110, %116 in 0 : vector<16x256xbf16>, vector<16x256xbf16>, vector<16x256xbf16>, vector<16x256xbf16>, vector<16x256xbf16>, vector<16x256xbf16>, vector<16x256xbf16>, vector<16x256xbf16>, vector<16x256xbf16> -> vector<144x256xbf16>
    %c0_23 = arith.constant 0 : index
    %c0_24 = arith.constant 0 : index
    %118 = vector.load %arg7[%c0_23, %c0_24] : memref<16x144xbf16, #tpu.memory_space<vmem>>, vector<16x144xbf16>
    %cst_25 = arith.constant dense<0.000000e+00> : vector<16x256xf32>
    %119 = tpu.matmul %118, %117, %cst_25 {dimension_numbers = #tpu.dot_dimension_numbers<[1], [0], [0], [1], [0, 0, 1, 1], [], []>} : vector<16x144xbf16>, vector<144x256xbf16>, vector<16x256xf32> -> vector<16x256xf32>
    %120 = arith.addf %1, %119 : vector<16x256xf32>
    %c0_26 = arith.constant 0 : index
    %c0_27 = arith.constant 0 : index
    %121 = vector.load %arg8[%c0_26, %c0_27] : memref<16x1xf32, #tpu.memory_space<vmem>>, vector<16x1xf32>
    %122 = vector.broadcast %121 : vector<16x1xf32> to vector<16x256xf32>
    %123 = arith.addf %120, %122 : vector<16x256xf32>
    %c0_28 = arith.constant 0 : index
    %c0_29 = arith.constant 0 : index
    %c0_30 = arith.constant 0 : index
    %124 = vector.load %arg9[%c0_28, %c0_29, %c0_30] : memref<1x16x256xf32, #tpu.memory_space<vmem>>, vector<1x16x256xf32>
    %125 = vector.shape_cast %124 : vector<1x16x256xf32> to vector<16x256xf32>
    %126 = vector.shape_cast %123 : vector<16x256xf32> to vector<1x16x256xf32>
    tpu.vector_store %arg9[%c0_28, %c0_29, %c0_30], %126 {strides = array<i32>} : memref<1x16x256xf32, #tpu.memory_space<vmem>>, vector<1x16x256xf32>,
    return
  }
  func.func @transform_0(%arg0: i32) -> (i32, i32, i32) {
    %c0_i32 = arith.constant 0 : i32
    %c0_i32_0 = arith.constant 0 : i32
    %c0_i32_1 = arith.constant 0 : i32
    return %arg0, %c0_i32, %c0_i32_0 : i32, i32, i32
  }
  func.func @transform_1(%arg0: i32) -> (i32, i32, i32) {
    %c0_i32 = arith.constant 0 : i32
    %c0_i32_0 = arith.constant 0 : i32
    %c0_i32_1 = arith.constant 0 : i32
    %c0_i32_2 = arith.constant 0 : i32
    return %c0_i32, %c0_i32_0, %c0_i32_1 : i32, i32, i32
  }
  func.func @transform_2(%arg0: i32) -> (i32, i32) {
    %c0_i32 = arith.constant 0 : i32
    %c0_i32_0 = arith.constant 0 : i32
    %c0_i32_1 = arith.constant 0 : i32
    return %c0_i32, %c0_i32_0 : i32, i32
  }
  func.func @transform_3(%arg0: i32) -> (i32, i32) {
    %c0_i32 = arith.constant 0 : i32
    %c0_i32_0 = arith.constant 0 : i32
    %c0_i32_1 = arith.constant 0 : i32
    return %c0_i32, %c0_i32_0 : i32, i32
  }
  func.func @transform_4(%arg0: i32) -> (i32, i32) {
    %c0_i32 = arith.constant 0 : i32
    %c0_i32_0 = arith.constant 0 : i32
    %c0_i32_1 = arith.constant 0 : i32
    return %c0_i32, %c0_i32_0 : i32, i32
  }
  func.func @transform_5(%arg0: i32) -> (i32, i32) {
    %c0_i32 = arith.constant 0 : i32
    %c0_i32_0 = arith.constant 0 : i32
    %c0_i32_1 = arith.constant 0 : i32
    return %c0_i32, %c0_i32_0 : i32, i32
  }
  func.func @transform_6(%arg0: i32) -> (i32, i32) {
    %c0_i32 = arith.constant 0 : i32
    %c0_i32_0 = arith.constant 0 : i32
    %c0_i32_1 = arith.constant 0 : i32
    return %c0_i32, %c0_i32_0 : i32, i32
  }
  func.func @transform_7(%arg0: i32) -> (i32, i32) {
    %c0_i32 = arith.constant 0 : i32
    %c0_i32_0 = arith.constant 0 : i32
    %c0_i32_1 = arith.constant 0 : i32
    return %c0_i32, %c0_i32_0 : i32, i32
  }
  func.func @transform_8(%arg0: i32) -> (i32, i32, i32) {
    %c0_i32 = arith.constant 0 : i32
    %c0_i32_0 = arith.constant 0 : i32
    %c0_i32_1 = arith.constant 0 : i32
    return %arg0, %c0_i32, %c0_i32_0 : i32, i32, i32
  }
}

</mosaic_0001>

<bundles_post_ra>
// kernel: residual_block.1
= control target key start
LH: loop header
LB: loop body
LE: loop exit
PB: predicated region body
PF: predicated region fallthrough
CT: control target
= control target key end

     0   :  { %s1061_s27 = smov 0   ;;  %s1605_s0 = inlined_call_operand.vmem [shape: f32[2,16,256], index: 0, kind: input, shape index: {}, may-alias: {0,8}]   ;;  %s1606_s1 = inlined_call_operand.vmem [shape: f32[9,1,256], index: 1, kind: input, shape index: {}]   ;;  %s1607_s2 = inlined_call_operand.vmem [shape: f32[16,1], index: 2, kind: input, shape index: {}]   ;;  %s1608_s3 = inlined_call_operand.vmem [shape: f32[16,1], index: 3, kind: input, shape index: {}]   ;;  %s1609_s4 = inlined_call_operand.vmem [shape: bf16[16,144], index: 4, kind: input, shape index: {}]   ;;  %s1610_s5 = inlined_call_operand.vmem [shape: f32[16,1], index: 5, kind: input, shape index: {}]   ;;  %s1611_s6 = inlined_call_operand.vmem [shape: bf16[16,144], index: 6, kind: input, shape index: {}]   ;;  %s1612_s7 = inlined_call_operand.vmem [shape: f32[16,1], index: 7, kind: input, shape index: {}]   ;;  %s1613_s8 = inlined_call_operand.vmem [shape: f32[2,16,256], index: 8, kind: output, shape index: {}, may-alias: {0,8}]  }
   0x1 LB: > { %s955_s28 = sadd.s32 4294967295, %s1005_s27   ;;  %p959_p0 = scmp.ge.s32.totalorder %s1005_s27, 1  ;;  %s1005_s27 = sphi %s1061_s27, %s18_s27  }
   0x2   : > { %p262_p1 = scmp.lt.s32.totalorder %s1005_s27, 3 }
   0x4   : > { %p263_p2 = pnand %p959_p0, %p262_p1 }
   0x5   : > { %v335_v0 = vld [vmem:[%s1608_s3] sm:$0xff] (!%p263_p2)  ;;  %v1007_v2 = vmov (!%p263_p2), 0   ;;  %v336_v3 = vld [vmem:[%s1608_s3 + $0x8] sm:$0xff] (!%p263_p2)  ;;  %p296_p3 = scmp.lt.s32.totalorder (!%p263_p2), %s955_s28, 1  ;;  %s1008_s19 = smov (!%p263_p2), 17   ;;  %vm622_vm0 = vcmask (!%p263_p2), 130048   ;;  %v363_v30 = vlaneseq (!%p263_p2) }
   0x6   : > { %266 = sbr.rel (%p263_p2) target bundleno = 951 (0x3b7), region = 52  ;;  %v319_v1 = vld [vmem:[%s1607_s2] sm:$0xff] (!%p263_p2)  ;;  %992 = vset.pattern.permute.xlu1 (!%p263_p2), %v1007_v2  ;;  %991 = vset.pattern.permute.xlu0 (!%p263_p2), %v1007_v2  ;;  %v320_v4 = vld [vmem:[%s1607_s2 + $0x8] sm:$0xff] (!%p263_p2)  ;;  %s1009_s20 = smov (!%p263_p2), 16  }
   0x7   : > { %339 = vperm.xlu1 (!%p263_p2), %992, %v335_v0   ;;  %323 = vperm.xlu0 (!%p263_p2), %991, %v319_v1   ;;  %s1010_s21 = smov (!%p263_p2), 15   ;;  %s1011_s22 = smov (!%p263_p2), 1   ;;  %v995_v27 = vld [vmem:[%s1609_s4 + $0x4] ss:$8 sps:$4 sm:$0xff] (!%p263_p2)   ;;  %v372_v31 = vshrl.u32 (!%p263_p2), %v363_v30, 7  ;;  %v1187_v33 = vand.u32 (!%p263_p2), 127, %v363_v30 }
   0x8   : > { %s1012_s23 = smov (!%p263_p2), 127   ;;  %s1013_s24 = smov (!%p263_p2), 113   ;;  %966 = vmatprep.mubr.msk.bf16.mxu0 (!%p263_p2), %vm622_vm0, %v995_v27  ;;  %v601_v28 = vld [vmem:[%s1610_s5] sm:$0xff] (!%p263_p2)  ;;  %v602_v29 = vld [vmem:[%s1610_s5 + $0x8] sm:$0xff] (!%p263_p2) }
   0x9   : > { %s1014_s25 = smov (!%p263_p2), 112   ;;  %s1015_s26 = smov (!%p263_p2), 111   ;;  %v1189_v34 = vsub.s32 (!%p263_p2), 0, %v372_v31  ;;  %v1191_v35 = vsub.s32 (!%p263_p2), 1, %v372_v31  ;;  %v311_v36 = vld [vmem:[%s1606_s1] sm:$0x3] (!%p263_p2) }
   0xa   : > { %vm365_vm1 = vcmp.lt.s32.totalorder (!%p263_p2), %v1187_v33, 17  ;;  %v312_v51 = vld [vmem:[%s1606_s1 + $0x2] sm:$0x3] (!%p263_p2)  ;;  %vm395_vm2 = vcmp.lt.s32.totalorder (!%p263_p2), %v1187_v33, 16  ;;  %vm425_vm3 = vcmp.lt.s32.totalorder (!%p263_p2), %v1187_v33, 15  ;;  %vm455_vm4 = vcmp.lt.s32.totalorder (!%p263_p2), %v1187_v33, 1 }
   0xb   : > { %344 = vperm.xlu1 (!%p263_p2), %992, %v336_v3   ;;  %328 = vperm.xlu0 (!%p263_p2), %991, %v320_v4   ;;  %v1198_v39 = vrot.slane (!%p263_p2), %v311_v36, %v1189_v34  ;;  %v1201_v40 = vrot.slane (!%p263_p2), %v311_v36, %v1191_v35  ;;  %v1220_v56 = vrot.slane (!%p263_p2), %v312_v51, %v1189_v34  ;;  %v313_v4 = vld [vmem:[%s1606_s1 + $0x4] sm:$0x3] (!%p263_p2)  ;;  %v314_v31 = vld [vmem:[%s1606_s1 + $0x6] sm:$0x3] (!%p263_p2)  ;;  %vm487_vm5 = vcmp.lt.s32.totalorder (!%p263_p2), %v1187_v33, 127 }
   0xc   : > { %v1223_v57 = vrot.slane (!%p263_p2), %v312_v51, %v1191_v35  ;;  %vm517_vm6 = vcmp.lt.s32.totalorder (!%p263_p2), %v1187_v33, 113  ;;  %vm547_vm7 = vcmp.lt.s32.totalorder (!%p263_p2), %v1187_v33, 112  ;;  %vm577_vm8 = vcmp.lt.s32.totalorder (!%p263_p2), %v1187_v33, 111 }
   0xd   : > { %s1615_s28 = smov (!%p296_p3, %s955_s28), 1 }
   0xe   : > { %s972_s15 = sshll.u32 %s1615_s28, 5 }
   0xf   : > { %s300_s18 = scalar_lea.vmem %s1605_s0, %s972_s15  ;;  %s305_s11 = scalar_lea.vmem %s1613_s8, %s972_s15 }
  0x10   : > { %v1089_v5 = vld [vmem:[%s300_s18] sm:$0xff]  ;;  %v1091_v6 = vld [vmem:[%s300_s18 + $0x8] sm:$0xff]  ;;  %v1095_v11 = vld [vmem:[%s300_s18 + $0x10] sm:$0xff] }
  0x11   : > { %v1097_v12 = vld [vmem:[%s300_s18 + $0x18] sm:$0xff] }
  0x86   : > { %v340_v7 = vpop.permute.xlu1 %339  ;;  %v324_v8 = vpop.permute.xlu0 %323 }
  0x87   : > { %v331_v9 = vmul.f32 %v324_v8, %v1089_v5  ;;  %v332_v10 = vmul.f32 %v324_v8, %v1091_v6 }
  0x89   : > { %v347_v13 = vadd.f32 %v340_v7, %v331_v9  ;;  %v348_v15 = vadd.f32 %v340_v7, %v332_v10 }
  0x8a   : > { %v329_v14 = vpop.permute.xlu0 %328  ;;  %v345_v19 = vpop.permute.xlu1 %344 }
  0x8b   : > { %v1099_v16 = vmax.f32 %v347_v13, 0.0  ;;  %v333_v17 = vmul.f32 %v329_v14, %v1095_v11  ;;  %v334_v18 = vmul.f32 %v329_v14, %v1097_v12  ;;  %v1105_v22 = vmax.f32 %v348_v15, 0.0 }
  0x8c   : > { %v1242_v13 = vrot.slane %v313_v4, %v1189_v34  ;;  %v1245_v14 = vrot.slane %v313_v4, %v1191_v35 }
  0x8d   : > { %v349_v20 = vadd.f32 %v345_v19, %v333_v17  ;;  %v350_v21 = vadd.f32 %v345_v19, %v334_v18  ;;  %355 = vrot.lane.b32.xlu0 %v1099_v16, %s1008_s19 }
  0x8f   : > { %v1107_v23 = vmax.f32 %v349_v20, 0.0  ;;  %v1109_v24 = vmax.f32 %v350_v21, 0.0 }
  0x91   : > { %357 = vrot.lane.b32.xlu1 %v1107_v23, %s1008_s19  ;;  %359 = vrot.lane.b32.xlu0 %v1105_v22, %s1008_s19  ;;  %v478_v25 = vpack.c.bf16 %v1109_v24, %v1105_v22  ;;  %v477_v26 = vpack.c.bf16 %v1107_v23, %v1099_v16 }
  0x95   : > { %361 = vrot.lane.b32.xlu1 %v1109_v24, %s1008_s19  ;;  %387 = vrot.lane.b32.xlu0 %v1099_v16, %s1009_s20 }
  0x99   : > { %389 = vrot.lane.b32.xlu1 %v1107_v23, %s1009_s20  ;;  %391 = vrot.lane.b32.xlu0 %v1105_v22, %s1009_s20 }
  0x9d   : > { %393 = vrot.lane.b32.xlu1 %v1109_v24, %s1009_s20  ;;  %417 = vrot.lane.b32.xlu0 %v1099_v16, %s1010_s21 }
  0xa1   : > { %419 = vrot.lane.b32.xlu1 %v1107_v23, %s1010_s21  ;;  %421 = vrot.lane.b32.xlu0 %v1105_v22, %s1010_s21 }
  0xa5   : > { %423 = vrot.lane.b32.xlu1 %v1109_v24, %s1010_s21  ;;  %447 = vrot.lane.b32.xlu0 %v1099_v16, %s1011_s22 }
  0xa9   : > { %449 = vrot.lane.b32.xlu1 %v1107_v23, %s1011_s22  ;;  %451 = vrot.lane.b32.xlu0 %v1105_v22, %s1011_s22 }
  0xad   : > { %453 = vrot.lane.b32.xlu1 %v1109_v24, %s1011_s22  ;;  %479 = vrot.lane.b32.xlu0 %v1099_v16, %s1012_s23 }
  0xb1   : > { %481 = vrot.lane.b32.xlu1 %v1107_v23, %s1012_s23  ;;  %483 = vrot.lane.b32.xlu0 %v1105_v22, %s1012_s23 }
  0xb5   : > { %485 = vrot.lane.b32.xlu1 %v1109_v24, %s1012_s23  ;;  %509 = vrot.lane.b32.xlu0 %v1099_v16, %s1013_s24 }
  0xb9   : > { %511 = vrot.lane.b32.xlu1 %v1107_v23, %s1013_s24  ;;  %513 = vrot.lane.b32.xlu0 %v1105_v22, %s1013_s24 }
  0xbd   : > { %515 = vrot.lane.b32.xlu1 %v1109_v24, %s1013_s24  ;;  %539 = vrot.lane.b32.xlu0 %v1099_v16, %s1014_s25 }
  0xc1   : > { %541 = vrot.lane.b32.xlu1 %v1107_v23, %s1014_s25  ;;  %543 = vrot.lane.b32.xlu0 %v1105_v22, %s1014_s25 }
  0xc5   : > { %545 = vrot.lane.b32.xlu1 %v1109_v24, %s1014_s25  ;;  %569 = vrot.lane.b32.xlu0 %v1099_v16, %s1015_s26 }
  0xc9   : > { %571 = vrot.lane.b32.xlu1 %v1107_v23, %s1015_s26  ;;  %573 = vrot.lane.b32.xlu0 %v1105_v22, %s1015_s26  ;;  %v316_v22 = vld [vmem:[%s1606_s1 + $0xc] sm:$0x3] }
  0xcd   : > { %575 = vrot.lane.b32.xlu1 %v1109_v24, %s1015_s26  ;;  %605 = vperm.xlu0 %991, %v601_v28  }
  0xd1   : > { %610 = vperm.xlu1 %992, %v602_v29  }
  0xff   : > { %v356_v32 = vpop.permute.xlu0 %355 }
 0x103   : > { %v358_v37 = vpop.permute.xlu1 %357  ;;  %v360_v38 = vpop.permute.xlu0 %359 }
 0x104   : > { %v366_v41 = vsel %vm365_vm1, %v356_v32, %v360_v38  ;;  %v368_v42 = vsel %vm365_vm1, %v360_v38, %v356_v32 }
 0x105   : > { %v381_v47 = vmul.f32 %v1198_v39, %v368_v42  ;;  %v382_v49 = vmul.f32 %v1201_v40, %v366_v41  ;;  %v1264_v41 = vrot.slane %v314_v31, %v1189_v34  ;;  %v1267_v42 = vrot.slane %v314_v31, %v1191_v35  ;;  %v317_v31 = vld [vmem:[%s1606_s1 + $0xe] sm:$0x3] }
 0x107   : > { %v362_v43 = vpop.permute.xlu1 %361  ;;  %v388_v44 = vpop.permute.xlu0 %387 }
 0x108   : > { %v367_v45 = vsel %vm365_vm1, %v358_v37, %v362_v43  ;;  %v369_v46 = vsel %vm365_vm1, %v362_v43, %v358_v37 }
 0x109   : > { %v383_v48 = vmul.f32 %v1198_v39, %v369_v46  ;;  %v384_v50 = vmul.f32 %v1201_v40, %v367_v45 }
 0x10b   : > { %v390_v52 = vpop.permute.xlu1 %389  ;;  %v392_v53 = vpop.permute.xlu0 %391  ;;  %v386_v54 = vpack.c.bf16 %v384_v50, %v382_v49  ;;  %v385_v55 = vpack.c.bf16 %v383_v48, %v381_v47 }
 0x10c   : > { %v396_v58 = vsel %vm395_vm2, %v388_v44, %v392_v53  ;;  %v398_v59 = vsel %vm395_vm2, %v392_v53, %v388_v44  ;;  %v315_v53 = vld [vmem:[%s1606_s1 + $0xa] sm:$0x3] }
 0x10d   : > { %626 = vmatprep.subr.bf16.mxu0 %v386_v54  ;;  %v411_v0 = vmul.f32 %v1220_v56, %v398_v59  ;;  %v412_v1 = vmul.f32 %v1223_v57, %v396_v58 }
 0x10e   : > { %627 = vmatpush1.bf16.msra.mxu0 %v385_v55 }
 0x10f   : > { %v394_v60 = vpop.permute.xlu1 %393  ;;  %v418_v61 = vpop.permute.xlu0 %417 }
 0x110   : > { %v397_v62 = vsel %vm395_vm2, %v390_v52, %v394_v60  ;;  %v399_v63 = vsel %vm395_vm2, %v394_v60, %v390_v52  ;;  %v1286_v60 = vrot.slane %v315_v53, %v1189_v34 }
 0x111   : > { %v413_v2 = vmul.f32 %v1220_v56, %v399_v63  ;;  %v414_v3 = vmul.f32 %v1223_v57, %v397_v62 }
 0x113   : > { %v420_v7 = vpop.permute.xlu1 %419  ;;  %v422_v8 = vpop.permute.xlu0 %421  ;;  %v416_v9 = vpack.c.bf16 %v414_v3, %v412_v1  ;;  %v415_v10 = vpack.c.bf16 %v413_v2, %v411_v0 }
 0x114   : > { %v426_v15 = vsel %vm425_vm3, %v418_v61, %v422_v8  ;;  %v428_v17 = vsel %vm425_vm3, %v422_v8, %v418_v61  ;;  %v1289_v61 = vrot.slane %v315_v53, %v1191_v35 }
 0x115   : > { %628 = vmatprep.subr.bf16.mxu0 %v416_v9  ;;  %v441_v27 = vmul.f32 %v1242_v13, %v428_v17  ;;  %v442_v28 = vmul.f32 %v1245_v14, %v426_v15  ;;  %v1314_v17 = vrot.slane %v316_v22, %v1189_v34 }
 0x116   : > { %629 = vmatpush1.bf16.msra.mxu0 %v415_v10 }
 0x117   : > { %v424_v18 = vpop.permute.xlu1 %423  ;;  %v448_v19 = vpop.permute.xlu0 %447 }
 0x118   : > { %v427_v20 = vsel %vm425_vm3, %v420_v7, %v424_v18  ;;  %v429_v21 = vsel %vm425_vm3, %v424_v18, %v420_v7  ;;  %v1317_v18 = vrot.slane %v316_v22, %v1191_v35 }
 0x119   : > { %v443_v29 = vmul.f32 %v1242_v13, %v429_v21  ;;  %v444_v30 = vmul.f32 %v1245_v14, %v427_v20 }
 0x11b   : > { %v450_v32 = vpop.permute.xlu1 %449  ;;  %v452_v36 = vpop.permute.xlu0 %451  ;;  %v446_v37 = vpack.c.bf16 %v444_v30, %v442_v28  ;;  %v445_v38 = vpack.c.bf16 %v443_v29, %v441_v27 }
 0x11c   : > { %v456_v43 = vsel %vm455_vm4, %v448_v19, %v452_v36  ;;  %v458_v44 = vsel %vm455_vm4, %v452_v36, %v448_v19 }
 0x11d   : > { %630 = vmatprep.subr.bf16.mxu0 %v446_v37  ;;  %v471_v49 = vmul.f32 %v1264_v41, %v458_v44  ;;  %v472_v50 = vmul.f32 %v1267_v42, %v456_v43  ;;  %v1336_v43 = vrot.slane %v317_v31, %v1189_v34  ;;  %v1339_v44 = vrot.slane %v317_v31, %v1191_v35 }
 0x11e   : > { %631 = vmatpush1.bf16.msra.mxu0 %v445_v38 }
 0x11f   : > { %v454_v45 = vpop.permute.xlu1 %453  ;;  %v480_v46 = vpop.permute.xlu0 %479 }
 0x120   : > { %v457_v47 = vsel %vm455_vm4, %v450_v32, %v454_v45  ;;  %v459_v48 = vsel %vm455_vm4, %v454_v45, %v450_v32 }
 0x121   : > { %v473_v51 = vmul.f32 %v1264_v41, %v459_v48  ;;  %v474_v52 = vmul.f32 %v1267_v42, %v457_v47 }
 0x123   : > { %v482_v54 = vpop.permute.xlu1 %481  ;;  %v484_v55 = vpop.permute.xlu0 %483  ;;  %v476_v58 = vpack.c.bf16 %v474_v52, %v472_v50  ;;  %v475_v59 = vpack.c.bf16 %v473_v51, %v471_v49 }
 0x124   : > { %v488_v62 = vsel %vm487_vm5, %v480_v46, %v484_v55  ;;  %v490_v63 = vsel %vm487_vm5, %v484_v55, %v480_v46  ;;  %v318_v55 = vld [vmem:[%s1606_s1 + $0x10] sm:$0x3] }
 0x125   : > { %632 = vmatprep.subr.bf16.mxu0 %v476_v58  ;;  %v503_v4 = vmul.f32 %v1286_v60, %v488_v62  ;;  %v504_v7 = vmul.f32 %v1289_v61, %v490_v63 }
 0x126   : > { %633 = vmatpush1.bf16.msra.mxu0 %v475_v59 }
 0x127   : > { %v486_v0 = vpop.permute.xlu1 %485  ;;  %634 = vmatprep.subr.bf16.mxu0 %v478_v25  ;;  %v510_v1 = vpop.permute.xlu0 %509 }
 0x128   : > { %v489_v2 = vsel %vm487_vm5, %v482_v54, %v486_v0  ;;  %v491_v3 = vsel %vm487_vm5, %v486_v0, %v482_v54  ;;  %v1358_v0 = vrot.slane %v318_v55, %v1189_v34 }
 0x129   : > { %v505_v8 = vmul.f32 %v1286_v60, %v489_v2  ;;  %v506_v9 = vmul.f32 %v1289_v61, %v491_v3 }
 0x12a   : > { %635 = vmatpush1.bf16.msra.mxu0 %v477_v26 }
 0x12b   : > { %v512_v24 = vpop.permute.xlu1 %511  ;;  %v514_v25 = vpop.permute.xlu0 %513  ;;  %v508_v10 = vpack.c.bf16 %v506_v9, %v504_v7  ;;  %v507_v15 = vpack.c.bf16 %v505_v8, %v503_v4 }
 0x12c   : > { %v518_v16 = vsel %vm517_vm6, %v510_v1, %v514_v25  ;;  %v520_v23 = vsel %vm517_vm6, %v514_v25, %v510_v1  ;;  %v1361_v1 = vrot.slane %v318_v55, %v1191_v35 }
 0x12d   : > { %636 = vmatprep.subr.bf16.mxu0 %v508_v10  ;;  %v533_v27 = vmul.f32 %v1314_v17, %v518_v16  ;;  %v534_v28 = vmul.f32 %v1317_v18, %v520_v23  ;;  %v993_v10 = vld [vmem:[%s1609_s4] ss:$8 sps:$4 sm:$0xff]  }
 0x12e   : > { %637 = vmatpush1.bf16.msra.mxu0 %v507_v15 }
 0x12f   : > { %v516_v26 = vpop.permute.xlu1 %515  ;;  %v540_v19 = vpop.permute.xlu0 %539 }
 0x130   : > { %v519_v20 = vsel %vm517_vm6, %v512_v24, %v516_v26  ;;  %v521_v21 = vsel %vm517_vm6, %v516_v26, %v512_v24 }
 0x131   : > { %v535_v29 = vmul.f32 %v1314_v17, %v519_v20  ;;  %v536_v30 = vmul.f32 %v1317_v18, %v521_v21 }
 0x133   : > { %v542_v32 = vpop.permute.xlu1 %541  ;;  %v544_v36 = vpop.permute.xlu0 %543  ;;  %v538_v37 = vpack.c.bf16 %v536_v30, %v534_v28  ;;  %v537_v38 = vpack.c.bf16 %v535_v29, %v533_v27 }
 0x134   : > { %v548_v45 = vsel %vm547_vm7, %v540_v19, %v544_v36  ;;  %v550_v46 = vsel %vm547_vm7, %v544_v36, %v540_v19 }
 0x135   : > { %638 = vmatprep.subr.bf16.mxu0 %v538_v37  ;;  %v563_v51 = vmul.f32 %v1336_v43, %v548_v45  ;;  %v564_v52 = vmul.f32 %v1339_v44, %v550_v46  ;;  %v998_v45 = vld [vmem:[%s1611_s6 + $0x4] ss:$8 sps:$4 sm:$0xff]  }
 0x136   : > { %639 = vmatpush1.bf16.msra.mxu0 %v537_v38  ;;  %969 = vmatprep.mubr.msk.bf16.mxu1 %vm622_vm0, %v998_v45  ;;  %v880_v46 = vld [vmem:[%s1612_s7] sm:$0xff] }
 0x137   : > { %v546_v47 = vpop.permute.xlu1 %545  ;;  %v570_v48 = vpop.permute.xlu0 %569 }
 0x138   : > { %v549_v49 = vsel %vm547_vm7, %v542_v32, %v546_v47  ;;  %v551_v50 = vsel %vm547_vm7, %v546_v47, %v542_v32  ;;  %v881_v47 = vld [vmem:[%s1612_s7 + $0x8] sm:$0xff] }
 0x139   : > { %v565_v53 = vmul.f32 %v1336_v43, %v549_v49  ;;  %v566_v54 = vmul.f32 %v1339_v44, %v551_v50 }
 0x13b   : > { %v572_v58 = vpop.permute.xlu1 %571  ;;  %v574_v59 = vpop.permute.xlu0 %573  ;;  %v568_v62 = vpack.c.bf16 %v566_v54, %v564_v52  ;;  %v567_v63 = vpack.c.bf16 %v565_v53, %v563_v51 }
 0x13c   : > { %v578_v2 = vsel %vm577_vm8, %v570_v48, %v574_v59  ;;  %v580_v3 = vsel %vm577_vm8, %v574_v59, %v570_v48 }
 0x13d   : > { %640 = vmatprep.subr.bf16.mxu0 %v568_v62  ;;  %v593_v34 = vmul.f32 %v1358_v0, %v578_v2  ;;  %v594_v35 = vmul.f32 %v1361_v1, %v580_v3 }
 0x13e   : > { %641 = vmatpush1.bf16.msra.mxu0 %v567_v63 }
 0x13f   : > { %v576_v4 = vpop.permute.xlu1 %575 }
 0x140   : > { %v579_v7 = vsel %vm577_vm8, %v572_v58, %v576_v4  ;;  %v581_v8 = vsel %vm577_vm8, %v576_v4, %v572_v58 }
 0x141   : > { %v595_v9 = vmul.f32 %v1358_v0, %v579_v7  ;;  %v596_v22 = vmul.f32 %v1361_v1, %v581_v8 }
 0x143   : > { %v598_v24 = vpack.c.bf16 %v596_v22, %v594_v35  ;;  %v597_v25 = vpack.c.bf16 %v595_v9, %v593_v34 }
 0x145   : > { %642 = vmatprep.subr.bf16.mxu0 %v598_v24 }
 0x146   : > { %643 = vmatpush1.bf16.msra.mxu0 %v597_v25 }
 0x149   : > { %659 = vmatmul.mubr.bf16.vlgmr.msra.gmra.mrb[0].mxu0 %v993_v10 }
 0x14c   : > { %v606_v15 = vpop.permute.xlu0 %605 }
 0x150   : > { %v611_v19 = vpop.permute.xlu1 %610 }
 0x21c   : > { %v660_v16 = vpop.f32.mrb[0].mxu0 }
 0x21d   : > { %v661_v23 = vadd.f32 %v660_v16, %v606_v15  ;;  %v662_v26 = vpop.f32.mrb[1].mxu0 }
 0x21e   : > { %v663_v20 = vadd.f32 %v662_v26, %v606_v15  ;;  %v664_v21 = vpop.f32.mrb[2].mxu0 }
 0x21f   : > { %v1378_v27 = vmax.f32 %v661_v23, 0.0  ;;  %v665_v28 = vadd.f32 %v664_v21, %v611_v19  ;;  %v666_v29 = vpop.f32.mrb[3].mxu0 }
 0x220   : > { %v667_v30 = vadd.f32 %v666_v29, %v611_v19  ;;  %v1384_v32 = vmax.f32 %v663_v20, 0.0 }
 0x221   : > { %v1380_v31 = vmax.f32 %v665_v28, 0.0  ;;  %673 = vrot.lane.b32.xlu0 %v1378_v27, %s1008_s19 }
 0x222   : > { %v1386_v36 = vmax.f32 %v667_v30, 0.0 }
 0x223   : > { %675 = vrot.lane.b32.xlu1 %v1380_v31, %s1008_s19  ;;  %v745_v37 = vpack.c.bf16 %v1380_v31, %v1378_v27 }
 0x224   : > { %v746_v38 = vpack.c.bf16 %v1386_v36, %v1384_v32 }
 0x225   : > { %691 = vrot.lane.b32.xlu0 %v1378_v27, %s1009_s20 }
 0x227   : > { %693 = vrot.lane.b32.xlu1 %v1380_v31, %s1009_s20 }
 0x229   : > { %709 = vrot.lane.b32.xlu0 %v1378_v27, %s1010_s21 }
 0x22b   : > { %711 = vrot.lane.b32.xlu1 %v1380_v31, %s1010_s21 }
 0x22d   : > { %727 = vrot.lane.b32.xlu0 %v1378_v27, %s1011_s22 }
 0x22f   : > { %729 = vrot.lane.b32.xlu1 %v1380_v31, %s1011_s22 }
 0x231   : > { %747 = vrot.lane.b32.xlu0 %v1378_v27, %s1012_s23 }
 0x233   : > { %749 = vrot.lane.b32.xlu1 %v1380_v31, %s1012_s23 }
 0x235   : > { %765 = vrot.lane.b32.xlu0 %v1378_v27, %s1013_s24 }
 0x237   : > { %767 = vrot.lane.b32.xlu1 %v1380_v31, %s1013_s24 }
 0x239   : > { %783 = vrot.lane.b32.xlu0 %v1378_v27, %s1014_s25 }
 0x23b   : > { %785 = vrot.lane.b32.xlu1 %v1380_v31, %s1014_s25 }
 0x23d   : > { %677 = vrot.lane.b32.xlu0 %v1384_v32, %s1008_s19 }
 0x23f   : > { %679 = vrot.lane.b32.xlu1 %v1386_v36, %s1008_s19 }
 0x241   : > { %695 = vrot.lane.b32.xlu0 %v1384_v32, %s1009_s20 }
 0x243   : > { %697 = vrot.lane.b32.xlu1 %v1386_v36, %s1009_s20 }
 0x245   : > { %713 = vrot.lane.b32.xlu0 %v1384_v32, %s1010_s21 }
 0x247   : > { %715 = vrot.lane.b32.xlu1 %v1386_v36, %s1010_s21 }
 0x249   : > { %731 = vrot.lane.b32.xlu0 %v1384_v32, %s1011_s22 }
 0x24b   : > { %733 = vrot.lane.b32.xlu1 %v1386_v36, %s1011_s22 }
 0x24d   : > { %801 = vrot.lane.b32.xlu0 %v1378_v27, %s1015_s26 }
 0x24f   : > { %803 = vrot.lane.b32.xlu1 %v1380_v31, %s1015_s26 }
 0x251   : > { %751 = vrot.lane.b32.xlu0 %v1384_v32, %s1012_s23 }
 0x253   : > { %753 = vrot.lane.b32.xlu1 %v1386_v36, %s1012_s23 }
 0x255   : > { %769 = vrot.lane.b32.xlu0 %v1384_v32, %s1013_s24 }
 0x257   : > { %771 = vrot.lane.b32.xlu1 %v1386_v36, %s1013_s24 }
 0x259   : > { %787 = vrot.lane.b32.xlu0 %v1384_v32, %s1014_s25 }
 0x25b   : > { %789 = vrot.lane.b32.xlu1 %v1386_v36, %s1014_s25 }
 0x25d   : > { %805 = vrot.lane.b32.xlu0 %v1384_v32, %s1015_s26 }
 0x25f   : > { %807 = vrot.lane.b32.xlu1 %v1386_v36, %s1015_s26 }
 0x261   : > { %884 = vperm.xlu0 %991, %v880_v46  }
 0x263   : > { %889 = vperm.xlu1 %992, %v881_v47  }
 0x293   : > { %v674_v48 = vpop.permute.xlu0 %673 }
 0x295   : > { %v676_v49 = vpop.permute.xlu1 %675 }
 0x297   : > { %v692_v50 = vpop.permute.xlu0 %691 }
 0x299   : > { %v694_v51 = vpop.permute.xlu1 %693 }
 0x29b   : > { %v710_v52 = vpop.permute.xlu0 %709 }
 0x29d   : > { %v712_v53 = vpop.permute.xlu1 %711 }
 0x29f   : > { %v728_v54 = vpop.permute.xlu0 %727 }
 0x2a1   : > { %v730_v55 = vpop.permute.xlu1 %729 }
 0x2a3   : > { %v1464_v58 = vpop.permute.xlu0 %747 }
 0x2a5   : > { %v1466_v59 = vpop.permute.xlu1 %749 }
 0x2a7   : > { %v1468_v62 = vpop.permute.xlu0 %765 }
 0x2a9   : > { %v1470_v63 = vpop.permute.xlu1 %767 }
 0x2ab   : > { %v1472_v2 = vpop.permute.xlu0 %783 }
 0x2ad   : > { %v1474_v3 = vpop.permute.xlu1 %785 }
 0x2af   : > { %v678_v4 = vpop.permute.xlu0 %677 }
 0x2b0   : > { %v681_v7 = vsel %vm365_vm1, %v674_v48, %v678_v4  ;;  %v683_v8 = vsel %vm365_vm1, %v678_v4, %v674_v48 }
 0x2b1   : > { %v680_v34 = vpop.permute.xlu1 %679  ;;  %v685_v22 = vmul.f32 %v683_v8, %v1198_v39  ;;  %v686_v10 = vmul.f32 %v681_v7, %v1201_v40 }
 0x2b2   : > { %v682_v35 = vsel %vm365_vm1, %v676_v49, %v680_v34  ;;  %v684_v9 = vsel %vm365_vm1, %v680_v34, %v676_v49 }
 0x2b3   : > { %v687_v24 = vmul.f32 %v684_v9, %v1198_v39  ;;  %v696_v25 = vpop.permute.xlu0 %695  ;;  %v688_v15 = vmul.f32 %v682_v35, %v1201_v40 }
 0x2b4   : > { %v699_v16 = vsel %vm395_vm2, %v692_v50, %v696_v25  ;;  %v701_v23 = vsel %vm395_vm2, %v696_v25, %v692_v50 }
 0x2b5   : > { %v698_v26 = vpop.permute.xlu1 %697  ;;  %v690_v19 = vpack.c.bf16 %v688_v15, %v686_v10  ;;  %v689_v20 = vpack.c.bf16 %v687_v24, %v685_v22  ;;  %v703_v28 = vmul.f32 %v701_v23, %v1220_v56  ;;  %v704_v29 = vmul.f32 %v699_v16, %v1223_v57 }
 0x2b6   : > { %v700_v21 = vsel %vm395_vm2, %v694_v51, %v698_v26  ;;  %v702_v39 = vsel %vm395_vm2, %v698_v26, %v694_v51 }
 0x2b7   : > { %v705_v40 = vmul.f32 %v702_v39, %v1220_v56  ;;  %v706_v30 = vmul.f32 %v700_v21, %v1223_v57  ;;  %833 = vmatprep.subr.bf16.mxu1 %v690_v19  ;;  %v714_v45 = vpop.permute.xlu0 %713 }
 0x2b8   : > { %v717_v46 = vsel %vm425_vm3, %v710_v52, %v714_v45  ;;  %v719_v47 = vsel %vm425_vm3, %v714_v45, %v710_v52  ;;  %834 = vmatpush1.bf16.msra.mxu1 %v689_v20 }
 0x2b9   : > { %v716_v48 = vpop.permute.xlu1 %715  ;;  %v708_v49 = vpack.c.bf16 %v706_v30, %v704_v29  ;;  %v707_v50 = vpack.c.bf16 %v705_v40, %v703_v28  ;;  %v721_v57 = vmul.f32 %v719_v47, %v1242_v13  ;;  %v722_v4 = vmul.f32 %v717_v46, %v1245_v14 }
 0x2ba   : > { %v718_v51 = vsel %vm425_vm3, %v712_v53, %v716_v48  ;;  %v720_v56 = vsel %vm425_vm3, %v716_v48, %v712_v53 }
 0x2bb   : > { %v723_v7 = vmul.f32 %v720_v56, %v1242_v13  ;;  %v724_v8 = vmul.f32 %v718_v51, %v1245_v14  ;;  %835 = vmatprep.subr.bf16.mxu1 %v708_v49  ;;  %v732_v52 = vpop.permute.xlu0 %731 }
 0x2bc   : > { %v735_v34 = vsel %vm455_vm4, %v728_v54, %v732_v52  ;;  %v737_v35 = vsel %vm455_vm4, %v732_v52, %v728_v54  ;;  %836 = vmatpush1.bf16.msra.mxu1 %v707_v50 }
 0x2bd   : > { %v734_v9 = vpop.permute.xlu1 %733  ;;  %v726_v22 = vpack.c.bf16 %v724_v8, %v722_v4  ;;  %v725_v53 = vpack.c.bf16 %v723_v7, %v721_v57  ;;  %v739_v14 = vmul.f32 %v737_v35, %v1264_v41  ;;  %v740_v25 = vmul.f32 %v735_v34, %v1267_v42 }
 0x2be   : > { %v736_v24 = vsel %vm455_vm4, %v730_v55, %v734_v9  ;;  %v738_v13 = vsel %vm455_vm4, %v734_v9, %v730_v55 }
 0x2bf   : > { %v741_v10 = vmul.f32 %v738_v13, %v1264_v41  ;;  %v742_v15 = vmul.f32 %v736_v24, %v1267_v42  ;;  %837 = vmatprep.subr.bf16.mxu1 %v726_v22  ;;  %v802_v54 = vpop.permute.xlu0 %801  ;;  %v996_v13 = vld [vmem:[%s1611_s6] ss:$8 sps:$4 sm:$0xff]  }
 0x2c0   : > { %838 = vmatpush1.bf16.msra.mxu1 %v725_v53 }
 0x2c1   : > { %v804_v16 = vpop.permute.xlu1 %803  ;;  %v744_v23 = vpack.c.bf16 %v742_v15, %v740_v25  ;;  %v743_v26 = vpack.c.bf16 %v741_v10, %v739_v14 }
 0x2c3   : > { %839 = vmatprep.subr.bf16.mxu1 %v744_v23  ;;  %v752_v19 = vpop.permute.xlu0 %751 }
 0x2c4   : > { %v755_v55 = vsel %vm487_vm5, %v1464_v58, %v752_v19  ;;  %v757_v20 = vsel %vm487_vm5, %v752_v19, %v1464_v58  ;;  %840 = vmatpush1.bf16.msra.mxu1 %v743_v26 }
 0x2c5   : > { %v754_v41 = vpop.permute.xlu1 %753  ;;  %841 = vmatprep.subr.bf16.mxu1 %v746_v38  ;;  %v759_v39 = vmul.f32 %v755_v55, %v1286_v60  ;;  %v760_v28 = vmul.f32 %v757_v20, %v1289_v61 }
 0x2c6   : > { %v756_v42 = vsel %vm487_vm5, %v1466_v59, %v754_v41  ;;  %v758_v21 = vsel %vm487_vm5, %v754_v41, %v1466_v59 }
 0x2c7   : > { %v761_v58 = vmul.f32 %v756_v42, %v1286_v60  ;;  %v762_v29 = vmul.f32 %v758_v21, %v1289_v61  ;;  %v770_v40 = vpop.permute.xlu0 %769 }
 0x2c8   : > { %v773_v32 = vsel %vm517_vm6, %v1468_v62, %v770_v40  ;;  %v775_v36 = vsel %vm517_vm6, %v770_v40, %v1468_v62  ;;  %842 = vmatpush1.bf16.msra.mxu1 %v745_v37 }
 0x2c9   : > { %v772_v38 = vpop.permute.xlu1 %771  ;;  %v764_v59 = vpack.c.bf16 %v762_v29, %v760_v28  ;;  %v763_v30 = vpack.c.bf16 %v761_v58, %v759_v39  ;;  %v777_v45 = vmul.f32 %v773_v32, %v1314_v17  ;;  %v778_v46 = vmul.f32 %v775_v36, %v1317_v18 }
 0x2ca   : > { %v774_v60 = vsel %vm517_vm6, %v1470_v63, %v772_v38  ;;  %v776_v61 = vsel %vm517_vm6, %v772_v38, %v1470_v63 }
 0x2cb   : > { %v779_v62 = vmul.f32 %v774_v60, %v1314_v17  ;;  %v780_v27 = vmul.f32 %v776_v61, %v1317_v18  ;;  %v788_v31 = vpop.permute.xlu0 %787  ;;  %843 = vmatprep.subr.bf16.mxu1 %v764_v59 }
 0x2cc   : > { %v791_v37 = vsel %vm547_vm7, %v1472_v2, %v788_v31  ;;  %v793_v47 = vsel %vm547_vm7, %v788_v31, %v1472_v2  ;;  %844 = vmatpush1.bf16.msra.mxu1 %v763_v30 }
 0x2cd   : > { %v790_v63 = vpop.permute.xlu1 %789  ;;  %v782_v48 = vpack.c.bf16 %v780_v27, %v778_v46  ;;  %v781_v49 = vpack.c.bf16 %v779_v62, %v777_v45  ;;  %v795_v50 = vmul.f32 %v791_v37, %v1336_v43  ;;  %v796_v51 = vmul.f32 %v793_v47, %v1339_v44 }
 0x2ce   : > { %v792_v17 = vsel %vm547_vm7, %v1474_v3, %v790_v63  ;;  %v794_v18 = vsel %vm547_vm7, %v790_v63, %v1474_v3 }
 0x2cf   : > { %v797_v56 = vmul.f32 %v792_v17, %v1336_v43  ;;  %v798_v2 = vmul.f32 %v794_v18, %v1339_v44  ;;  %v806_v57 = vpop.permute.xlu0 %805  ;;  %845 = vmatprep.subr.bf16.mxu1 %v782_v48 }
 0x2d0   : > { %v809_v4 = vsel %vm577_vm8, %v802_v54, %v806_v57  ;;  %v811_v7 = vsel %vm577_vm8, %v806_v57, %v802_v54  ;;  %846 = vmatpush1.bf16.msra.mxu1 %v781_v49 }
 0x2d1   : > { %v808_v8 = vpop.permute.xlu1 %807  ;;  %v800_v52 = vpack.c.bf16 %v798_v2, %v796_v51  ;;  %v799_v3 = vpack.c.bf16 %v797_v56, %v795_v50  ;;  %v813_v44 = vmul.f32 %v809_v4, %v1358_v0  ;;  %v814_v35 = vmul.f32 %v811_v7, %v1361_v1 }
 0x2d2   : > { %v810_v34 = vsel %vm577_vm8, %v804_v16, %v808_v8  ;;  %v812_v43 = vsel %vm577_vm8, %v808_v8, %v804_v16 }
 0x2d3   : > { %v815_v9 = vmul.f32 %v810_v34, %v1358_v0  ;;  %v816_v22 = vmul.f32 %v812_v43, %v1361_v1  ;;  %847 = vmatprep.subr.bf16.mxu1 %v800_v52 }
 0x2d4   : > { %848 = vmatpush1.bf16.msra.mxu1 %v799_v3 }
 0x2d5   : > { %v818_v53 = vpack.c.bf16 %v816_v22, %v814_v35  ;;  %v817_v24 = vpack.c.bf16 %v815_v9, %v813_v44 }
 0x2d7   : > { %849 = vmatprep.subr.bf16.mxu1 %v818_v53 }
 0x2d8   : > { %850 = vmatpush1.bf16.msra.mxu1 %v817_v24 }
 0x2db   : > { %866 = vmatmul.mubr.bf16.vlgmr.msra.gmra.mrb[0].mxu1 %v996_v13 }
 0x2e0   : > { %v885_v0 = vpop.permute.xlu0 %884 }
 0x2e2   : > { %v890_v23 = vpop.permute.xlu1 %889 }
 0x3ae   : > { %v867_v33 = vpop.f32.mrb[0].mxu1 }
 0x3af   : > { %v876_v14 = vadd.f32 %v867_v33, %v1089_v5  ;;  %v869_v25 = vpop.f32.mrb[1].mxu1 }
 0x3b0   : > { %v877_v1 = vadd.f32 %v869_v25, %v1091_v6  ;;  %v871_v10 = vpop.f32.mrb[2].mxu1 }
 0x3b1   : > { %v892_v15 = vadd.f32 %v885_v0, %v876_v14  ;;  %v878_v54 = vadd.f32 %v871_v10, %v1095_v11  ;;  %v873_v16 = vpop.f32.mrb[3].mxu1 }
 0x3b2   : > { %v893_v26 = vadd.f32 %v885_v0, %v877_v1  ;;  %v879_v19 = vadd.f32 %v873_v16, %v1097_v12 }
 0x3b3   : > { %896 = vst [vmem:[%s305_s11] sm:$0xff] %v892_v15  ;;  %v894_v5 = vadd.f32 %v890_v23, %v878_v54 }
 0x3b4   : > { %897 = vst [vmem:[%s305_s11 + $0x8] sm:$0xff] %v893_v26  ;;  %v895_v55 = vadd.f32 %v890_v23, %v879_v19 }
 0x3b5   : > { %898 = vst [vmem:[%s305_s11 + $0x10] sm:$0xff] %v894_v5 }
 0x3b6   : > { %899 = vst [vmem:[%s305_s11 + $0x18] sm:$0xff] %v895_v55 }
 0x3b7 PF: > { %s18_s27 = sadd.s32 1, %s1005_s27  }
 0x3b8   : > { %p15_p4 = scmp.ge.s32.totalorder %s18_s27, 4  }
 0x3ba   :  { %17 = sbr.rel (!%p15_p4) target bundleno = 1 (0x1), region = 82 }

</bundles_post_ra>
